<compile_context>
chip_gen: v5e
topology: v5e:2x2
jax: 0.10.0
libtpu: 0.0.40
codegen_flags: <defaults>
</compile_context>

<pallas_src>
import functools

import jax
import jax.numpy as jnp
import numpy as np
from jax import lax
from jax.experimental import pallas as pl
from jax.experimental.pallas import tpu as pltpu


def _round_up(x, m):
    return (x + m - 1) // m * m


# ---------------------------------------------------------------------------
# Pallas kernel: fused in-VMEM im2col + matmul + bias + PReLU for one
# (batch, output-depth) slice of a 3x3x3 / pad=1 / stride=1 Conv3d.
#
#   x{0,1,2}_ref : (1, 1, Cp, S2p)   bf16  padded input depth slices d, d+1, d+2
#                  (channels on sublanes, flattened padded H*W on lanes)
#   w_ref        : (Coutp, 27*Cp)    bf16  [co, (kd*9+kh*3+kw)*Cp + ci]
#   ba_ref       : (Coutp, 2)        f32   column 0 = bias, column 1 = PReLU alpha
#   o_ref        : (1, 1, Coutp, Rp) f32   flat output, Rp = round_up(H*(W+2), 128)
# ---------------------------------------------------------------------------
def _conv_prelu_kernel(x0_ref, x1_ref, x2_ref, w_ref, ba_ref, o_ref, *, w_dim, r_pad):
    wp = w_dim + 2
    xs = (x0_ref[0, 0], x1_ref[0, 0], x2_ref[0, 0])           # each (Cp, S2p) bf16
    pieces = []
    for kd in range(3):
        xkd = xs[kd]
        for kh in range(3):
            for kw in range(3):
                off = kh * wp + kw                            # static lane offset
                pieces.append(xkd[:, off:off + r_pad])        # (Cp, Rp)
    patches = jnp.concatenate(pieces, axis=0)                 # (27*Cp, Rp) bf16
    y = jnp.dot(w_ref[...], patches,
                preferred_element_type=jnp.float32)           # (Coutp, Rp) f32 on MXU
    ba = ba_ref[...]                                          # (Coutp, 2) f32
    bias = ba[:, 0:1]
    alpha = ba[:, 1:2]
    y = y + bias
    o_ref[0, 0] = jnp.where(y > 0.0, y, alpha * y)


# ---------------------------------------------------------------------------
# One Conv3d(3x3x3, pad=1) + PReLU layer.
#   x_ndchw: (N, D, C, H, W) float32   (channel-second layout, no NDHWC round trips)
#   returns: (N, D, Cout, H, W) float32
# ---------------------------------------------------------------------------
def _conv3d_prelu_layer(x_ndchw, w_oidhw, b, alpha, *, compute_dtype=jnp.bfloat16):
    N, D, C, H, W = x_ndchw.shape
    Cout = w_oidhw.shape[0]
    Cp = _round_up(max(C, 8), 8)
    Coutp = _round_up(max(Cout, 8), 8)
    Rp = _round_up(H * (W + 2), 128)                  # lane-dense output width
    S2p = _round_up(Rp + 2 * (W + 2) + 2, 128)        # lane-dense padded input width

    # --- operand prep: cheap layout passes, fused by XLA (no 27x expansion) ---
    xp = jnp.pad(x_ndchw, ((0, 0), (1, 1), (0, Cp - C), (1, 1), (1, 1)))
    xp = xp.reshape(N, D + 2, Cp, (H + 2) * (W + 2))
    xp = jnp.pad(xp, ((0, 0), (0, 0), (0, 0), (0, S2p - (H + 2) * (W + 2))))
    xp = xp.astype(compute_dtype)

    # weight (Cout, Cin, 3, 3, 3) -> (Coutp, 27*Cp), columns ordered (kd, kh, kw, ci)
    wt = jnp.transpose(w_oidhw, (0, 2, 3, 4, 1))              # (Cout, 3, 3, 3, Cin)
    wt = jnp.pad(wt, ((0, Coutp - Cout), (0, 0), (0, 0), (0, 0), (0, Cp - C)))
    wt = wt.reshape(Coutp, 27 * Cp).astype(compute_dtype)

    ba = jnp.stack(
        [jnp.pad(b, (0, Coutp - Cout)), jnp.pad(alpha, (0, Coutp - Cout))],
        axis=1,
    ).astype(jnp.float32)                                     # (Coutp, 2)

    kernel = functools.partial(_conv_prelu_kernel, w_dim=W, r_pad=Rp)

    out = pl.pallas_call(
        kernel,
        out_shape=jax.ShapeDtypeStruct((N, D, Coutp, Rp), jnp.float32),
        grid_spec=pltpu.PrefetchScalarGridSpec(
            num_scalar_prefetch=0,
            grid=(N, D),
            in_specs=[
                pl.BlockSpec((1, 1, Cp, S2p), lambda n, d: (n, d, 0, 0)),
                pl.BlockSpec((1, 1, Cp, S2p), lambda n, d: (n, d + 1, 0, 0)),
                pl.BlockSpec((1, 1, Cp, S2p), lambda n, d: (n, d + 2, 0, 0)),
                pl.BlockSpec((Coutp, 27 * Cp), lambda n, d: (0, 0)),
                pl.BlockSpec((Coutp, 2), lambda n, d: (0, 0)),
            ],
            out_specs=pl.BlockSpec((1, 1, Coutp, Rp), lambda n, d: (n, d, 0, 0)),
        ),
        compiler_params=pltpu.CompilerParams(
            dimension_semantics=("parallel", "parallel"),
            vmem_limit_bytes=48 * 1024 * 1024,
        ),
    )(xp, xp, xp, wt, ba)

    # (N, D, Coutp, Rp) -> (N, D, Cout, H, W): drop channel pad, garbage lanes, pad cols
    out = out[:, :, :Cout, : H * (W + 2)]
    out = out.reshape(N, D, Cout, H, W + 2)[..., :W]
    return out


# ---------------------------------------------------------------------------
# Encoder forward: x is NCDHW (PyTorch convention)
# ---------------------------------------------------------------------------
def encoder_forward(x_ncdhw, params, *, compute_dtype=jnp.bfloat16):
    x = jnp.transpose(x_ncdhw, (0, 2, 1, 3, 4))          # NCDHW -> (N, D, C, H, W)
    x = _conv3d_prelu_layer(x, params["w1"], params["b1"], params["a1"],
                            compute_dtype=compute_dtype)
    x = _conv3d_prelu_layer(x, params["w2"], params["b2"], params["a2"],
                            compute_dtype=compute_dtype)
    return jnp.transpose(x, (0, 2, 1, 3, 4))             # (N, D, C, H, W) -> NCDHW


def init_encoder_params(key, in_channel, out_channel):
    k1, k2, k3, k4 = jax.random.split(key, 4)
    fan1 = in_channel * 27
    fan2 = out_channel * 27
    return {
        "w1": jax.random.normal(k1, (out_channel, in_channel, 3, 3, 3), jnp.float32)
        / np.sqrt(fan1),
        "b1": jax.random.normal(k2, (out_channel,), jnp.float32) * 0.01,
        "a1": jnp.full((out_channel,), 0.25, jnp.float32),   # PReLU init = 0.25
        "w2": jax.random.normal(k3, (out_channel, out_channel, 3, 3, 3), jnp.float32)
        / np.sqrt(fan2),
        "b2": jax.random.normal(k4, (out_channel,), jnp.float32) * 0.01,
        "a2": jnp.full((out_channel,), 0.25, jnp.float32),
    }


# ---------------------------------------------------------------------------
# Pure-JAX reference (lax conv).  Operands are quantized to the same bf16 the
# kernel feeds the MXU; accumulation stays f32, so tolerances can be tight.
# ---------------------------------------------------------------------------
def _reference_forward(x_ncdhw, params, compute_dtype=jnp.bfloat16):
    def q(t):
        return t.astype(compute_dtype).astype(jnp.float32)

    def conv_prelu(x, w, b, a):
        y = lax.conv_general_dilated(
            q(x), q(w), window_strides=(1, 1, 1),
            padding=((1, 1), (1, 1), (1, 1)),
            dimension_numbers=("NCDHW", "OIDHW", "NCDHW"),
            precision=lax.Precision.HIGHEST,
        )
        y = y + b.reshape(1, -1, 1, 1, 1)
        a = a.reshape(1, -1, 1, 1, 1)
        return jnp.where(y > 0, y, a * y)

    x = conv_prelu(x_ncdhw, params["w1"], params["b1"], params["a1"])
    x = conv_prelu(x, params["w2"], params["b2"], params["a2"])
    return x


if __name__ == "__main__":
    key = jax.random.PRNGKey(0)
    kx, kp = jax.random.split(key)

    N, Cin, Cout, D, H, W = 2, 4, 8, 16, 16, 16
    x = jax.random.normal(kx, (N, Cin, D, H, W), jnp.float32)
    params = init_encoder_params(kp, Cin, Cout)

    out = jax.jit(encoder_forward)(x, params)
    out = jax.block_until_ready(out)

    ref = _reference_forward(x, params)
    assert out.shape == (N, Cout, D, H, W), out.shape
    max_err = float(jnp.max(jnp.abs(out - ref)))
    assert jnp.allclose(out, ref, atol=3e-2, rtol=3e-2), f"mismatch vs reference (max abs err {max_err})"

    print("KERNEL_OK")
</pallas_src>

<mosaic_0001>
module attributes {stable_mosaic.version = 11 : i64} {
  func.func @_conv_prelu_kernel(%arg0: i32, %arg1: i32, %arg2: memref<1x1x8x512xbf16, #tpu.memory_space<vmem>>, %arg3: memref<1x1x8x512xbf16, #tpu.memory_space<vmem>>, %arg4: memref<1x1x8x512xbf16, #tpu.memory_space<vmem>>, %arg5: memref<8x216xbf16, #tpu.memory_space<vmem>>, %arg6: memref<8x2xf32, #tpu.memory_space<vmem>>, %arg7: memref<1x1x8x384xf32, #tpu.memory_space<vmem>>) attributes {dimension_semantics = [#tpu.dimension_semantics<parallel>, #tpu.dimension_semantics<parallel>], iteration_bounds = array<i64: 2, 16>, scalar_prefetch = 0 : i64, scratch_operands = 0 : i64, tpu.core_type = #tpu.core_type<tc>, window_params = [{transform_indices = @transform_0, window_bounds = array<i64: 1, 1, 8, 512>}, {transform_indices = @transform_1, window_bounds = array<i64: 1, 1, 8, 512>}, {transform_indices = @transform_2, window_bounds = array<i64: 1, 1, 8, 512>}, {pipeline_mode = #tpu.pipeline_mode<synchronous>, transform_indices = @transform_3, window_bounds = array<i64: 8, 216>}, {pipeline_mode = #tpu.pipeline_mode<synchronous>, transform_indices = @transform_4, window_bounds = array<i64: 8, 2>}, {transform_indices = @transform_5, window_bounds = array<i64: 1, 1, 8, 384>}]} {
    %c0 = arith.constant 0 : index
    %c0_0 = arith.constant 0 : index
    %c0_1 = arith.constant 0 : index
    %c0_2 = arith.constant 0 : index
    %0 = vector.load %arg2[%c0, %c0_0, %c0_1, %c0_2] : memref<1x1x8x512xbf16, #tpu.memory_space<vmem>>, vector<1x1x8x512xbf16>
    %1 = vector.shape_cast %0 : vector<1x1x8x512xbf16> to vector<8x512xbf16>
    %c0_3 = arith.constant 0 : index
    %c0_4 = arith.constant 0 : index
    %c0_5 = arith.constant 0 : index
    %c0_6 = arith.constant 0 : index
    %2 = vector.load %arg3[%c0_3, %c0_4, %c0_5, %c0_6] : memref<1x1x8x512xbf16, #tpu.memory_space<vmem>>, vector<1x1x8x512xbf16>
    %3 = vector.shape_cast %2 : vector<1x1x8x512xbf16> to vector<8x512xbf16>
    %c0_7 = arith.constant 0 : index
    %c0_8 = arith.constant 0 : index
    %c0_9 = arith.constant 0 : index
    %c0_10 = arith.constant 0 : index
    %4 = vector.load %arg4[%c0_7, %c0_8, %c0_9, %c0_10] : memref<1x1x8x512xbf16, #tpu.memory_space<vmem>>, vector<1x1x8x512xbf16>
    %5 = vector.shape_cast %4 : vector<1x1x8x512xbf16> to vector<8x512xbf16>
    %6 = vector.extract_strided_slice %1 {offsets = [0, 0], sizes = [8, 384], strides = [1, 1]} : vector<8x512xbf16> to vector<8x384xbf16>
    %7 = vector.extract_strided_slice %1 {offsets = [0, 1], sizes = [8, 384], strides = [1, 1]} : vector<8x512xbf16> to vector<8x384xbf16>
    %8 = vector.extract_strided_slice %1 {offsets = [0, 2], sizes = [8, 384], strides = [1, 1]} : vector<8x512xbf16> to vector<8x384xbf16>
    %9 = vector.extract_strided_slice %1 {offsets = [0, 18], sizes = [8, 384], strides = [1, 1]} : vector<8x512xbf16> to vector<8x384xbf16>
    %10 = vector.extract_strided_slice %1 {offsets = [0, 19], sizes = [8, 384], strides = [1, 1]} : vector<8x512xbf16> to vector<8x384xbf16>
    %11 = vector.extract_strided_slice %1 {offsets = [0, 20], sizes = [8, 384], strides = [1, 1]} : vector<8x512xbf16> to vector<8x384xbf16>
    %12 = vector.extract_strided_slice %1 {offsets = [0, 36], sizes = [8, 384], strides = [1, 1]} : vector<8x512xbf16> to vector<8x384xbf16>
    %13 = vector.extract_strided_slice %1 {offsets = [0, 37], sizes = [8, 384], strides = [1, 1]} : vector<8x512xbf16> to vector<8x384xbf16>
    %14 = vector.extract_strided_slice %1 {offsets = [0, 38], sizes = [8, 384], strides = [1, 1]} : vector<8x512xbf16> to vector<8x384xbf16>
    %15 = vector.extract_strided_slice %3 {offsets = [0, 0], sizes = [8, 384], strides = [1, 1]} : vector<8x512xbf16> to vector<8x384xbf16>
    %16 = vector.extract_strided_slice %3 {offsets = [0, 1], sizes = [8, 384], strides = [1, 1]} : vector<8x512xbf16> to vector<8x384xbf16>
    %17 = vector.extract_strided_slice %3 {offsets = [0, 2], sizes = [8, 384], strides = [1, 1]} : vector<8x512xbf16> to vector<8x384xbf16>
    %18 = vector.extract_strided_slice %3 {offsets = [0, 18], sizes = [8, 384], strides = [1, 1]} : vector<8x512xbf16> to vector<8x384xbf16>
    %19 = vector.extract_strided_slice %3 {offsets = [0, 19], sizes = [8, 384], strides = [1, 1]} : vector<8x512xbf16> to vector<8x384xbf16>
    %20 = vector.extract_strided_slice %3 {offsets = [0, 20], sizes = [8, 384], strides = [1, 1]} : vector<8x512xbf16> to vector<8x384xbf16>
    %21 = vector.extract_strided_slice %3 {offsets = [0, 36], sizes = [8, 384], strides = [1, 1]} : vector<8x512xbf16> to vector<8x384xbf16>
    %22 = vector.extract_strided_slice %3 {offsets = [0, 37], sizes = [8, 384], strides = [1, 1]} : vector<8x512xbf16> to vector<8x384xbf16>
    %23 = vector.extract_strided_slice %3 {offsets = [0, 38], sizes = [8, 384], strides = [1, 1]} : vector<8x512xbf16> to vector<8x384xbf16>
    %24 = vector.extract_strided_slice %5 {offsets = [0, 0], sizes = [8, 384], strides = [1, 1]} : vector<8x512xbf16> to vector<8x384xbf16>
    %25 = vector.extract_strided_slice %5 {offsets = [0, 1], sizes = [8, 384], strides = [1, 1]} : vector<8x512xbf16> to vector<8x384xbf16>
    %26 = vector.extract_strided_slice %5 {offsets = [0, 2], sizes = [8, 384], strides = [1, 1]} : vector<8x512xbf16> to vector<8x384xbf16>
    %27 = vector.extract_strided_slice %5 {offsets = [0, 18], sizes = [8, 384], strides = [1, 1]} : vector<8x512xbf16> to vector<8x384xbf16>
    %28 = vector.extract_strided_slice %5 {offsets = [0, 19], sizes = [8, 384], strides = [1, 1]} : vector<8x512xbf16> to vector<8x384xbf16>
    %29 = vector.extract_strided_slice %5 {offsets = [0, 20], sizes = [8, 384], strides = [1, 1]} : vector<8x512xbf16> to vector<8x384xbf16>
    %30 = vector.extract_strided_slice %5 {offsets = [0, 36], sizes = [8, 384], strides = [1, 1]} : vector<8x512xbf16> to vector<8x384xbf16>
    %31 = vector.extract_strided_slice %5 {offsets = [0, 37], sizes = [8, 384], strides = [1, 1]} : vector<8x512xbf16> to vector<8x384xbf16>
    %32 = vector.extract_strided_slice %5 {offsets = [0, 38], sizes = [8, 384], strides = [1, 1]} : vector<8x512xbf16> to vector<8x384xbf16>
    %33 = tpu.concatenate %6, %7, %8, %9, %10, %11, %12, %13, %14, %15, %16, %17, %18, %19, %20, %21 in 0 : vector<8x384xbf16>, vector<8x384xbf16>, vector<8x384xbf16>, vector<8x384xbf16>, vector<8x384xbf16>, vector<8x384xbf16>, vector<8x384xbf16>, vector<8x384xbf16>, vector<8x384xbf16>, vector<8x384xbf16>, vector<8x384xbf16>, vector<8x384xbf16>, vector<8x384xbf16>, vector<8x384xbf16>, vector<8x384xbf16>, vector<8x384xbf16> -> vector<128x384xbf16>
    %34 = tpu.concatenate %22, %23, %24, %25, %26, %27, %28, %29, %30, %31, %32 in 0 : vector<8x384xbf16>, vector<8x384xbf16>, vector<8x384xbf16>, vector<8x384xbf16>, vector<8x384xbf16>, vector<8x384xbf16>, vector<8x384xbf16>, vector<8x384xbf16>, vector<8x384xbf16>, vector<8x384xbf16>, vector<8x384xbf16> -> vector<88x384xbf16>
    %35 = tpu.concatenate %33, %34 in 0 : vector<128x384xbf16>, vector<88x384xbf16> -> vector<216x384xbf16>
    %c0_11 = arith.constant 0 : index
    %c0_12 = arith.constant 0 : index
    %36 = vector.load %arg5[%c0_11, %c0_12] : memref<8x216xbf16, #tpu.memory_space<vmem>>, vector<8x216xbf16>
    %cst = arith.constant dense<0.000000e+00> : vector<8x384xf32>
    %37 = tpu.matmul %36, %35, %cst {dimension_numbers = #tpu.dot_dimension_numbers<[1], [0], [0], [1], [0, 0, 1, 1], [], []>} : vector<8x216xbf16>, vector<216x384xbf16>, vector<8x384xf32> -> vector<8x384xf32>
    %c0_13 = arith.constant 0 : index
    %c0_14 = arith.constant 0 : index
    %38 = vector.load %arg6[%c0_13, %c0_14] : memref<8x2xf32, #tpu.memory_space<vmem>>, vector<8x2xf32>
    %39 = vector.extract_strided_slice %38 {offsets = [0, 0], sizes = [8, 1], strides = [1, 1]} : vector<8x2xf32> to vector<8x1xf32>
    %40 = vector.extract_strided_slice %38 {offsets = [0, 1], sizes = [8, 1], strides = [1, 1]} : vector<8x2xf32> to vector<8x1xf32>
    %41 = vector.broadcast %39 : vector<8x1xf32> to vector<8x384xf32>
    %42 = arith.addf %37, %41 : vector<8x384xf32>
    %cst_15 = arith.constant 0.000000e+00 : f32
    %43 = vector.broadcast %cst_15 : f32 to vector<8x384xf32>
    %44 = arith.cmpf ogt, %42, %43 : vector<8x384xf32>
    %45 = vector.broadcast %40 : vector<8x1xf32> to vector<8x384xf32>
    %46 = arith.mulf %45, %42 : vector<8x384xf32>
    %47 = arith.select %44, %42, %46 : vector<8x384xi1>, vector<8x384xf32>
    %c0_16 = arith.constant 0 : index
    %c0_17 = arith.constant 0 : index
    %c0_18 = arith.constant 0 : index
    %c0_19 = arith.constant 0 : index
    %48 = vector.load %arg7[%c0_16, %c0_17, %c0_18, %c0_19] : memref<1x1x8x384xf32, #tpu.memory_space<vmem>>, vector<1x1x8x384xf32>
    %49 = vector.shape_cast %48 : vector<1x1x8x384xf32> to vector<8x384xf32>
    %50 = vector.shape_cast %47 : vector<8x384xf32> to vector<1x1x8x384xf32>
    tpu.vector_store %arg7[%c0_16, %c0_17, %c0_18, %c0_19], %50 {strides = array<i32>} : memref<1x1x8x384xf32, #tpu.memory_space<vmem>>, vector<1x1x8x384xf32>,
    return
  }
  func.func @transform_0(%arg0: i32, %arg1: i32) -> (i32, i32, i32, i32) {
    %c0_i32 = arith.constant 0 : i32
    %c0_i32_0 = arith.constant 0 : i32
    %c0_i32_1 = arith.constant 0 : i32
    return %arg0, %arg1, %c0_i32, %c0_i32_0 : i32, i32, i32, i32
  }
  func.func @transform_1(%arg0: i32, %arg1: i32) -> (i32, i32, i32, i32) {
    %c1_i32 = arith.constant 1 : i32
    %0 = arith.addi %arg1, %c1_i32 : i32
    %c0_i32 = arith.constant 0 : i32
    %c0_i32_0 = arith.constant 0 : i32
    %c0_i32_1 = arith.constant 0 : i32
    return %arg0, %0, %c0_i32, %c0_i32_0 : i32, i32, i32, i32
  }
  func.func @transform_2(%arg0: i32, %arg1: i32) -> (i32, i32, i32, i32) {
    %c2_i32 = arith.constant 2 : i32
    %0 = arith.addi %arg1, %c2_i32 : i32
    %c0_i32 = arith.constant 0 : i32
    %c0_i32_0 = arith.constant 0 : i32
    %c0_i32_1 = arith.constant 0 : i32
    return %arg0, %0, %c0_i32, %c0_i32_0 : i32, i32, i32, i32
  }
  func.func @transform_3(%arg0: i32, %arg1: i32) -> (i32, i32) {
    %c0_i32 = arith.constant 0 : i32
    %c0_i32_0 = arith.constant 0 : i32
    %c0_i32_1 = arith.constant 0 : i32
    return %c0_i32, %c0_i32_0 : i32, i32
  }
  func.func @transform_4(%arg0: i32, %arg1: i32) -> (i32, i32) {
    %c0_i32 = arith.constant 0 : i32
    %c0_i32_0 = arith.constant 0 : i32
    %c0_i32_1 = arith.constant 0 : i32
    return %c0_i32, %c0_i32_0 : i32, i32
  }
  func.func @transform_5(%arg0: i32, %arg1: i32) -> (i32, i32, i32, i32) {
    %c0_i32 = arith.constant 0 : i32
    %c0_i32_0 = arith.constant 0 : i32
    %c0_i32_1 = arith.constant 0 : i32
    return %arg0, %arg1, %c0_i32, %c0_i32_0 : i32, i32, i32, i32
  }
}

</mosaic_0001>

<bundles_post_ra>
// kernel: encoder_forward.2
= control target key start
LH: loop header
LB: loop body
LE: loop exit
PB: predicated region body
PF: predicated region fallthrough
CT: control target
= control target key end

     0   :  { %s1310_s18 = smov 0   ;;  %s1312_s19 = smov 0   ;;  %s1889_s0 = inlined_call_operand.vmem [shape: bf16[2,18,8,512], index: 0, kind: input, shape index: {}, may-alias: {0,1,2}]   ;;  %s1890_s1 = inlined_call_operand.vmem [shape: bf16[2,18,8,512], index: 1, kind: input, shape index: {}, may-alias: {0,1,2}]   ;;  %s1891_s2 = inlined_call_operand.vmem [shape: bf16[2,18,8,512], index: 2, kind: input, shape index: {}, may-alias: {0,1,2}]   ;;  %s1892_s3 = inlined_call_operand.vmem [shape: bf16[8,216], index: 3, kind: input, shape index: {}]   ;;  %s1893_s4 = inlined_call_operand.vmem [shape: f32[8,2], index: 4, kind: input, shape index: {}]   ;;  %s1894_s5 = inlined_call_operand.vmem [shape: f32[2,16,8,384], index: 5, kind: output, shape index: {}]  }
   0x1   :  { %s1314_s20 = smov 0   ;;  %s1316_s21 = smov 0  }
   0x2   :  { %s1318_s22 = smov 0  }
   0x3 LB: > { %s24_s23 = sadd.s32 1, %s1253_s20  ;;  %s27_s24 = sadd.s32 1, %s1257_s21  ;;  %s1261_s22 = sphi %s1318_s22, %s15_s22   ;;  %s1257_s21 = sphi %s1316_s21, %s1907_s21   ;;  %s1253_s20 = sphi %s1314_s20, %s1906_s20   ;;  %s1249_s19 = sphi %s1312_s19, %s1905_s19   ;;  %s1245_s18 = sphi %s1310_s18, %s1904_s18  }
   0x4   : > { %p25_p0 = scmp.ge.s32.totalorder %s24_s23, 16  ;;  %p1147_p1 = scmp.ge.s32.totalorder %s1261_s22, 1 }
   0x5   : > { %p247_p2 = scmp.lt.s32.totalorder %s1261_s22, 33 }
   0x6   : > { %s1909_s23 = smov (%p25_p0, %s24_s23), 0  ;;  %s1911_s24 = smov (!%p25_p0, %s27_s24), %s1257_s21 }
   0x7   : > { %p248_p3 = pnand %p1147_p1, %p247_p2  ;;  %p29_p4 = scmp.ge.s32.totalorder %s1911_s24, 2 }
   0x8   : > { %p303_p5 = scmp.lt.s32.totalorder (!%p248_p3), %s1249_s19, 1  ;;  %p305_p6 = scmp.lt.s32.totalorder (!%p248_p3), %s1245_s18, 17 }
   0x9   : > { %s1913_s24 = smov (%p29_p4, %s1911_s24), 0  ;;  %251 = sbr.rel (%p248_p3) target bundleno = 611 (0x263), region = 40 }
   0xa   : > { %s1263_s8 = smov (!%p248_p3), 127   ;;  %s1897_s9 = smov (!%p248_p3), 126  }
   0xb   : > { %s1265_s10 = smov (!%p248_p3), 110   ;;  %s1899_s11 = smov (!%p248_p3), 109  }
   0xc   : > { %s323_s12 = sadd.s32 (!%p248_p3), 2, %s1245_s18  ;;  %s1267_s13 = smov (!%p248_p3), 108  }
   0xd   : > { %p326_p7 = scmp.lt.s32.totalorder (!%p248_p3), %s323_s12, 17  ;;  %s1268_s14 = smov (!%p248_p3), 92  }
   0xe   : > { %s1915_s19 = smov (!%p303_p5, %s1249_s19), 1  ;;  %s1895_s30 = smov 90   ;;  %vm380_vm0 = vcmask 1031168   ;;  %vm368_vm1 = vcmask 1039360   ;;  %vm392_vm2 = vcmask 900096   ;;  %vm532_vm3 = vcmask 1043456  }
   0xf   : > { %s306_s25 = scalar_select %p305_p6, %s1245_s18, 17  ;;  %vm404_vm4 = vcmask 891904   ;;  %vm416_vm5 = vcmask 883712   ;;  %vm428_vm6 = vcmask 752640   ;;  %vm440_vm7 = vcmask 744448  }
  0x10   : > { %s1347_s26 = smul.u32 72, %s1915_s19  ;;  %s1917_s12 = smov (!%p326_p7, %s323_s12), 17  ;;  %vm716_vm8 = vcmask 7168   ;;  %vm692_vm9 = vcmask 146432   ;;  %vm704_vm10 = vcmask 138240   ;;  %vm668_vm11 = vcmask 285696  }
  0x11   : > { %s1148_s27 = sshll.u32 %s306_s25, 2  ;;  %s1152_s15 = sshll.u32 %s1917_s12, 2  ;;  %vm680_vm12 = vcmask 154624   ;;  %vm643_vm13 = vcmask 302080   ;;  %vm656_vm14 = vcmask 293888   ;;  %vm452_vm15 = vcmask 736256  }
  0x12   : > { %s309_s28 = sadd.s32 %s1347_s26, %s1148_s27  ;;  %s330_s16 = sadd.s32 %s1347_s26, %s1152_s15 }
  0x13   : > { %s1149_s29 = sshll.u32 %s309_s28, 2  ;;  %s1153_s17 = sshll.u32 %s330_s16, 2 }
  0x14   : > { %s311_s7 = scalar_lea.vmem %s1889_s0, %s1149_s29  ;;  %s332_s28 = scalar_lea.vmem %s1891_s2, %s1153_s17 }
  0x15   : > { %v345_v0 = vld [vmem:[%s311_s7 + $0x8] sm:$0xff]  ;;  %v344_v1 = vld [vmem:[%s311_s7] sm:$0xff]  ;;  %s1269_s29 = smov 91   ;;  %s1271_s6 = smov 1  }
  0x16   : > { %v354_v2 = vunpack.c.l.b16 %v345_v0  ;;  %v352_v3 = vunpack.c.l.b16 %v344_v1  ;;  %v358_v6 = vunpack.c.h.b16 %v345_v0  ;;  %v353_v7 = vunpack.c.h.b16 %v344_v1  ;;  %v348_v10 = vld [vmem:[%s332_s28] sm:$0xff]  ;;  %v349_v13 = vld [vmem:[%s332_s28 + $0x8] sm:$0xff]  ;;  %s1272_s7 = smov 18   ;;  %s1273_s12 = smov 17  }
  0x17   : > { %v632_v11 = vunpack.c.h.b16 %v348_v10  ;;  %v646_v14 = vunpack.c.h.b16 %v349_v13  ;;  %v631_v15 = vunpack.c.l.b16 %v348_v10  ;;  %v633_v16 = vunpack.c.l.b16 %v349_v13  ;;  %s312_s15 = sadd.s32 1, %s1245_s18  ;;  %s1274_s16 = smov 35  }
  0x18   : > { %v1353_v4 = vpack.c.b16 %v354_v2, %v354_v2  ;;  %v1355_v5 = vpack.c.b16 %v352_v3, %v352_v3  ;;  %v1363_v8 = vpack.c.b16 %v358_v6, %v358_v6  ;;  %v1365_v9 = vpack.c.b16 %v353_v7, %v353_v7  ;;  %p315_p8 = scmp.lt.s32.totalorder %s312_s15, 17  ;;  %s1275_s17 = smov 19  }
  0x19   : > { %v1420_v12 = vpack.c.b16 %v632_v11, %v632_v11  ;;  %v1428_v17 = vpack.c.b16 %v646_v14, %v646_v14  ;;  %v1430_v18 = vpack.c.b16 %v631_v15, %v631_v15  ;;  %v1432_v19 = vpack.c.b16 %v633_v16, %v633_v16  ;;  %p336_p9 = scmp.lt.s32.totalorder %s1245_s18, 15 }
  0x1a   : > { %364 = vrot.lane.b32.xlu1 %v1353_v4, %s1263_s8  ;;  %372 = vrot.lane.b32.xlu2 %v1355_v5, %s1897_s9  ;;  %s1919_s15 = smov (!%p315_p8, %s312_s15), 17 }
  0x1b   : > { %360 = vrot.lane.b32.xlu0 %v1355_v5, %s1263_s8  ;;  %s1150_s25 = sshll.u32 %s1919_s15, 2  ;;  %s1921_s18 = smov (!%p336_p9, %s1245_s18), 15 }
  0x1c   : > { %s319_s27 = sadd.s32 %s1347_s26, %s1150_s25  ;;  %s1277_s26 = smov 36  }
  0x1d   : > { %s1151_s28 = sshll.u32 %s319_s27, 2 }
  0x22   : > { %366 = vrot.lane.b32.xlu1 %v1363_v8, %s1263_s8  ;;  %374 = vrot.lane.b32.xlu2 %v1365_v9, %s1897_s9 }
  0x23   : > { %362 = vrot.lane.b32.xlu0 %v1365_v9, %s1263_s8 }
  0x2a   : > { %378 = vrot.lane.b32.xlu1 %v1363_v8, %s1897_s9  ;;  %384 = vrot.lane.b32.xlu2 %v1355_v5, %s1265_s10 }
  0x2b   : > { %376 = vrot.lane.b32.xlu0 %v1353_v4, %s1897_s9  ;;  %s1902_s9 = smov 126  }
  0x32   : > { %388 = vrot.lane.b32.xlu1 %v1353_v4, %s1265_s10  ;;  %390 = vrot.lane.b32.xlu2 %v1363_v8, %s1265_s10 }
  0x33   : > { %386 = vrot.lane.b32.xlu0 %v1365_v9, %s1265_s10 }
  0x3a   : > { %398 = vrot.lane.b32.xlu1 %v1365_v9, %s1899_s11  ;;  %400 = vrot.lane.b32.xlu2 %v1353_v4, %s1899_s11 }
  0x3b   : > { %396 = vrot.lane.b32.xlu0 %v1355_v5, %s1899_s11 }
  0x42   : > { %408 = vrot.lane.b32.xlu1 %v1355_v5, %s1267_s13  ;;  %410 = vrot.lane.b32.xlu2 %v1365_v9, %s1267_s13 }
  0x43   : > { %402 = vrot.lane.b32.xlu0 %v1363_v8, %s1899_s11  ;;  %s321_s11 = scalar_lea.vmem %s1890_s1, %s1151_s28 }
  0x44   : > { %v347_v38 = vld [vmem:[%s321_s11 + $0x8] sm:$0xff]  ;;  %v346_v39 = vld [vmem:[%s321_s11] sm:$0xff]  ;;  %s1903_s11 = smov 90  }
  0x45   : > { %v460_v40 = vunpack.c.l.b16 %v347_v38  ;;  %v464_v41 = vunpack.c.h.b16 %v347_v38  ;;  %v459_v42 = vunpack.c.h.b16 %v346_v39  ;;  %v458_v60 = vunpack.c.l.b16 %v346_v39 }
  0x47   : > { %v1499_v47 = vpack.c.b16 %v460_v40, %v460_v40  ;;  %v1503_v50 = vpack.c.b16 %v464_v41, %v464_v41  ;;  %v1508_v52 = vpack.c.b16 %v459_v42, %v459_v42  ;;  %v1536_v3 = vpack.c.b16 %v458_v60, %v458_v60 }
  0x4a   : > { %414 = vrot.lane.b32.xlu1 %v1363_v8, %s1267_s13  ;;  %420 = vrot.lane.b32.xlu2 %v1355_v5, %s1268_s14 }
  0x4b   : > { %412 = vrot.lane.b32.xlu0 %v1353_v4, %s1267_s13 }
  0x52   : > { %424 = vrot.lane.b32.xlu1 %v1353_v4, %s1268_s14  ;;  %426 = vrot.lane.b32.xlu2 %v1363_v8, %s1268_s14 }
  0x53   : > { %422 = vrot.lane.b32.xlu0 %v1365_v9, %s1268_s14 }
  0x5a   : > { %434 = vrot.lane.b32.xlu1 %v1365_v9, %s1269_s29  ;;  %436 = vrot.lane.b32.xlu2 %v1353_v4, %s1269_s29 }
  0x5b   : > { %432 = vrot.lane.b32.xlu0 %v1355_v5, %s1269_s29 }
  0x62   : > { %444 = vrot.lane.b32.xlu1 %v1355_v5, %s1895_s30  ;;  %722 = vrot.lane.b32.xlu2 %v1420_v12, %s1263_s8  ;;  %s1276_s30 = smov 37  }
  0x63   : > { %438 = vrot.lane.b32.xlu0 %v1363_v8, %s1269_s29 }
  0x6a   : > { %726 = vrot.lane.b32.xlu1 %v1428_v17, %s1263_s8  ;;  %708 = vrot.lane.b32.xlu2 %v1430_v18, %s1271_s6 }
  0x6b   : > { %724 = vrot.lane.b32.xlu0 %v1432_v19, %s1263_s8 }
  0x72   : > { %712 = vrot.lane.b32.xlu1 %v1432_v19, %s1271_s6  ;;  %720 = vrot.lane.b32.xlu2 %v1430_v18, %s1263_s8 }
  0x73   : > { %710 = vrot.lane.b32.xlu0 %v1420_v12, %s1271_s6 }
  0x74   : > { %v373_v20 = vpop.permute.xlu2 %372 }
  0x7a   : > { %686 = vrot.lane.b32.xlu1 %v1420_v12, %s1272_s7  ;;  %688 = vrot.lane.b32.xlu2 %v1432_v19, %s1272_s7 }
  0x7b   : > { %684 = vrot.lane.b32.xlu0 %v1430_v18, %s1272_s7 }
  0x7c   : > { %v375_v21 = vpop.permute.xlu2 %374 }
  0x7d   : > { %v1453_v22 = vsel %vm380_vm0, %v373_v20, %v375_v21 }
  0x82   : > { %698 = vrot.lane.b32.xlu1 %v1420_v12, %s1273_s12  ;;  %700 = vrot.lane.b32.xlu2 %v1432_v19, %s1273_s12 }
  0x83   : > { %696 = vrot.lane.b32.xlu0 %v1430_v18, %s1273_s12 }
  0x84   : > { %v385_v23 = vpop.permute.xlu2 %384 }
  0x8a   : > { %662 = vrot.lane.b32.xlu1 %v1420_v12, %s1274_s16  ;;  %664 = vrot.lane.b32.xlu2 %v1432_v19, %s1274_s16 }
  0x8b   : > { %660 = vrot.lane.b32.xlu0 %v1430_v18, %s1274_s16 }
  0x8c   : > { %v365_v24 = vpop.permute.xlu1 %364  ;;  %v391_v25 = vpop.permute.xlu2 %390 }
  0x8d   : > { %v361_v26 = vpop.permute.xlu0 %360 }
  0x92   : > { %674 = vrot.lane.b32.xlu1 %v1420_v12, %s1275_s17  ;;  %676 = vrot.lane.b32.xlu2 %v1432_v19, %s1275_s17 }
  0x93   : > { %672 = vrot.lane.b32.xlu0 %v1430_v18, %s1275_s17 }
  0x94   : > { %v367_v27 = vpop.permute.xlu1 %366  ;;  %v401_v28 = vpop.permute.xlu2 %400 }
  0x95   : > { %v1475_v29 = vsel %vm368_vm1, %v365_v24, %v367_v27  ;;  %v363_v30 = vpop.permute.xlu0 %362 }
  0x96   : > { %v1479_v31 = vsel %vm368_vm1, %v361_v26, %v363_v30  ;;  %v1482_v32 = vsel %vm368_vm1, %v363_v30, %v365_v24 }
  0x9a   : > { %639 = vrot.lane.b32.xlu1 %v1420_v12, %s1276_s30  ;;  %641 = vrot.lane.b32.xlu2 %v1432_v19, %s1276_s30 }
  0x9b   : > { %637 = vrot.lane.b32.xlu0 %v1430_v18, %s1276_s30  ;;  %s1162_s30 = smul.u32 48, %s1915_s19 }
  0x9c   : > { %v379_v33 = vpop.permute.xlu1 %378  ;;  %v411_v34 = vpop.permute.xlu2 %410 }
  0x9d   : > { %v377_v35 = vpop.permute.xlu0 %376 }
  0x9e   : > { %v382_v36 = vsel %vm380_vm0, %v375_v21, %v377_v35  ;;  %v383_v37 = vsel %vm380_vm0, %v377_v35, %v379_v33 }
  0xa2   : > { %650 = vrot.lane.b32.xlu1 %v1420_v12, %s1277_s26  ;;  %652 = vrot.lane.b32.xlu2 %v1432_v19, %s1277_s26 }
  0xa3   : > { %648 = vrot.lane.b32.xlu0 %v1430_v18, %s1277_s26 }
  0xa4   : > { %v389_v43 = vpop.permute.xlu1 %388  ;;  %v421_v44 = vpop.permute.xlu2 %420 }
  0xa5   : > { %v395_v45 = vsel %vm392_vm2, %v389_v43, %v391_v25  ;;  %v387_v46 = vpop.permute.xlu0 %386 }
  0xa6   : > { %v393_v48 = vsel %vm392_vm2, %v385_v23, %v387_v46  ;;  %v394_v49 = vsel %vm392_vm2, %v387_v46, %v389_v43  ;;  %v1506_v51 = vsel %vm532_vm3, %v383_v37, %v395_v45 }
  0xa7   : > { %v1511_v53 = vsel %vm532_vm3, %v382_v36, %v394_v49  ;;  %v1515_v54 = vsel %vm532_vm3, %v1453_v22, %v393_v48 }
  0xaa   : > { %470 = vrot.lane.b32.xlu1 %v1499_v47, %s1263_s8  ;;  %472 = vrot.lane.b32.xlu2 %v1503_v50, %s1263_s8 }
  0xab   : > { %468 = vrot.lane.b32.xlu0 %v1508_v52, %s1263_s8 }
  0xac   : > { %v399_v55 = vpop.permute.xlu1 %398  ;;  %v427_v56 = vpop.permute.xlu2 %426 }
  0xad   : > { %v406_v57 = vsel %vm404_vm4, %v399_v55, %v401_v28  ;;  %v397_v58 = vpop.permute.xlu0 %396 }
  0xae   : > { %v405_v59 = vsel %vm404_vm4, %v397_v58, %v399_v55 }
  0xb2   : > { %690 = vrot.lane.b32.xlu1 %v1428_v17, %s1272_s7  ;;  %702 = vrot.lane.b32.xlu2 %v1428_v17, %s1273_s12 }
  0xb3   : > { %714 = vrot.lane.b32.xlu0 %v1428_v17, %s1271_s6  ;;  %s1161_s6 = smul.u32 3, %s1921_s18 }
  0xb4   : > { %v409_v61 = vpop.permute.xlu1 %408  ;;  %v437_v62 = vpop.permute.xlu2 %436 }
  0xb5   : > { %v417_v63 = vsel %vm416_vm5, %v409_v61, %v411_v34  ;;  %v403_v0 = vpop.permute.xlu0 %402  ;;  %s340_s7 = sadd.s32 %s1162_s30, %s1161_s6 }
  0xb6   : > { %v407_v1 = vsel %vm404_vm4, %v401_v28, %v403_v0  ;;  %v1534_v2 = vsel %vm532_vm3, %v405_v59, %v417_v63  ;;  %s1154_s12 = sshll.u32 %s340_s7, 3 }
  0xb7   : > { %s342_s25 = scalar_lea.vmem %s1894_s5, %s1154_s12 }
  0xba   : > { %666 = vrot.lane.b32.xlu1 %v1428_v17, %s1274_s16  ;;  %678 = vrot.lane.b32.xlu2 %v1428_v17, %s1275_s17 }
  0xbb   : > { %466 = vrot.lane.b32.xlu0 %v1536_v3, %s1263_s8  ;;  %s1901_s8 = smov 109  }
  0xbc   : > { %v415_v6 = vpop.permute.xlu1 %414  ;;  %v723_v7 = vpop.permute.xlu2 %722 }
  0xbd   : > { %v413_v10 = vpop.permute.xlu0 %412 }
  0xbe   : > { %v418_v11 = vsel %vm416_vm5, %v411_v34, %v413_v10  ;;  %v419_v13 = vsel %vm416_vm5, %v413_v10, %v415_v6 }
  0xbf   : > { %v1547_v14 = vsel %vm532_vm3, %v406_v57, %v418_v11  ;;  %v1550_v15 = vsel %vm532_vm3, %v407_v1, %v419_v13 }
  0xc3   : > { %654 = vrot.lane.b32.xlu0 %v1428_v17, %s1277_s26 }
  0xc4   : > { %v425_v16 = vpop.permute.xlu1 %424  ;;  %v709_v20 = vpop.permute.xlu2 %708 }
  0xc5   : > { %v431_v21 = vsel %vm428_vm6, %v425_v16, %v427_v56  ;;  %v423_v22 = vpop.permute.xlu0 %422 }
  0xc6   : > { %v429_v23 = vsel %vm428_vm6, %v421_v44, %v423_v22  ;;  %v430_v24 = vsel %vm428_vm6, %v423_v22, %v425_v16 }
  0xcc   : > { %v435_v25 = vpop.permute.xlu1 %434  ;;  %v721_v26 = vpop.permute.xlu2 %720 }
  0xcd   : > { %v442_v27 = vsel %vm440_vm7, %v435_v25, %v437_v62  ;;  %v433_v28 = vpop.permute.xlu0 %432  ;;  %v728_v56 = vsel %vm368_vm1, %v721_v26, %v723_v7 }
  0xce   : > { %v441_v30 = vsel %vm440_vm7, %v433_v28, %v435_v25  ;;  %v1560_v33 = vsel %vm532_vm3, %v430_v24, %v442_v27 }
  0xcf   : > { %v1563_v34 = vsel %vm532_vm3, %v429_v23, %v441_v30 }
  0xd4   : > { %v1565_v35 = vpop.permute.xlu1 %444  ;;  %v1567_v36 = vpop.permute.xlu2 %688 }
  0xd5   : > { %v439_v37 = vpop.permute.xlu0 %438 }
  0xd6   : > { %v443_v38 = vsel %vm440_vm7, %v437_v62, %v439_v37 }
  0xd7   : > { %v1571_v39 = vsel %vm532_vm3, %v431_v21, %v443_v38  ;;  %v775_v21 = vsel %vm532_vm3, %v709_v20, %v1430_v18 }
  0xdc   : > { %v1573_v40 = vpop.permute.xlu1 %726  ;;  %v701_v41 = vpop.permute.xlu2 %700 }
  0xdd   : > { %v725_v42 = vpop.permute.xlu0 %724 }
  0xde   : > { %v730_v43 = vsel %vm368_vm1, %v725_v42, %v1573_v40  ;;  %v729_v44 = vsel %vm368_vm1, %v723_v7, %v725_v42 }
  0xdf   : > { %849 = vrot.lane.b32.xlu2 %v730_v43, %s1269_s29  ;;  %847 = vrot.lane.b32.xlu1 %v729_v44, %s1269_s29 }
  0xe4   : > { %v1580_v45 = vpop.permute.xlu1 %712  ;;  %v1582_v46 = vpop.permute.xlu2 %664 }
  0xe5   : > { %v711_v48 = vpop.permute.xlu0 %710 }
  0xe6   : > { %v717_v49 = vsel %vm716_vm8, %v709_v20, %v711_v48  ;;  %v718_v55 = vsel %vm716_vm8, %v711_v48, %v1580_v45 }
  0xe7   : > { %845 = vrot.lane.b32.xlu2 %v728_v56, %s1269_s29  ;;  %v781_v57 = vsel %vm532_vm3, %v718_v55, %v1432_v19  ;;  %v778_v58 = vsel %vm532_vm3, %v717_v49, %v1420_v12 }
  0xe8   : > { %841 = vrot.lane.b32.xlu1 %v781_v57, %s1269_s29  ;;  %839 = vrot.lane.b32.xlu0 %v778_v58, %s1269_s29 }
  0xec   : > { %v687_v59 = vpop.permute.xlu1 %686  ;;  %v677_v60 = vpop.permute.xlu2 %676 }
  0xed   : > { %v685_v61 = vpop.permute.xlu0 %684  ;;  %v694_v62 = vsel %vm692_vm9, %v687_v59, %v1567_v36 }
  0xee   : > { %v693_v1 = vsel %vm692_vm9, %v685_v61, %v687_v59 }
  0xef   : > { %523 = vrot.lane.b32.xlu2 %v1508_v52, %s1268_s14 }
  0xf0   : > { %514 = vrot.lane.b32.xlu1 %v1499_v47, %s1267_s13  ;;  %512 = vrot.lane.b32.xlu0 %v1508_v52, %s1267_s13 }
  0xf4   : > { %v699_v19 = vpop.permute.xlu1 %698  ;;  %v1601_v12 = vpop.permute.xlu2 %641 }
  0xf5   : > { %v706_v63 = vsel %vm704_vm10, %v699_v19, %v701_v41  ;;  %v697_v0 = vpop.permute.xlu0 %696 }
  0xf6   : > { %v705_v6 = vsel %vm704_vm10, %v697_v0, %v699_v19  ;;  %v769_v7 = vsel %vm532_vm3, %v694_v62, %v706_v63 }
  0xf7   : > { %833 = vrot.lane.b32.xlu2 %v769_v7, %s1269_s29  ;;  %v766_v10 = vsel %vm532_vm3, %v693_v1, %v705_v6 }
  0xf8   : > { %525 = vrot.lane.b32.xlu0 %v1499_v47, %s1268_s14  ;;  %831 = vrot.lane.b32.xlu1 %v766_v10, %s1269_s29 }
  0xfc   : > { %v663_v11 = vpop.permute.xlu1 %662  ;;  %v1614_v13 = vpop.permute.xlu2 %652 }
  0xfd   : > { %v661_v16 = vpop.permute.xlu0 %660  ;;  %v670_v18 = vsel %vm668_vm11, %v663_v11, %v1582_v46 }
  0xfe   : > { %v669_v22 = vsel %vm668_vm11, %v661_v16, %v663_v11 }
  0xff   : > { %492 = vrot.lane.b32.xlu2 %v1499_v47, %s1265_s10 }
 0x100   : > { %837 = vrot.lane.b32.xlu0 %v775_v21, %s1269_s29  ;;  %490 = vrot.lane.b32.xlu1 %v1508_v52, %s1265_s10 }
 0x104   : > { %v675_v23 = vpop.permute.xlu1 %674  ;;  %v1624_v24 = vpop.permute.xlu2 %472 }
 0x105   : > { %v673_v25 = vpop.permute.xlu0 %672  ;;  %v682_v20 = vsel %vm680_vm12, %v675_v23, %v677_v60 }
 0x106   : > { %v681_v26 = vsel %vm680_vm12, %v673_v25, %v675_v23  ;;  %v757_v42 = vsel %vm532_vm3, %v670_v18, %v682_v20 }
 0x107   : > { %v754_v27 = vsel %vm532_vm3, %v669_v22, %v681_v26 }
 0x108   : > { %501 = vrot.lane.b32.xlu0 %v1508_v52, %s1901_s8  ;;  %503 = vrot.lane.b32.xlu1 %v1499_v47, %s1901_s8 }
 0x109   : > { %823 = vrot.lane.b32.xlu2 %v754_v27, %s1269_s29 }
 0x10c   : > { %v640_v28 = vpop.permute.xlu1 %639  ;;  %v703_v30 = vpop.permute.xlu2 %702 }
 0x10d   : > { %v707_v37 = vsel %vm704_vm10, %v701_v41, %v703_v30  ;;  %v638_v38 = vpop.permute.xlu0 %637  ;;  %v763_v41 = vsel %vm532_vm3, %v685_v61, %v697_v0  ;;  %v645_v57 = vsel %vm643_vm13, %v640_v28, %v1601_v12 }
 0x10e   : > { %v644_v58 = vsel %vm643_vm13, %v638_v38, %v640_v28 }
 0x110   : > { %825 = vrot.lane.b32.xlu0 %v757_v42, %s1269_s29  ;;  %510 = vrot.lane.b32.xlu1 %v1536_v3, %s1267_s13 }
 0x111   : > { %516 = vrot.lane.b32.xlu2 %v1503_v50, %s1267_s13 }
 0x114   : > { %v651_v43 = vpop.permute.xlu1 %650  ;;  %v679_v44 = vpop.permute.xlu2 %678 }
 0x115   : > { %v683_v48 = vsel %vm680_vm12, %v677_v60, %v679_v44  ;;  %v649_v49 = vpop.permute.xlu0 %648  ;;  %v658_v59 = vsel %vm656_vm14, %v651_v43, %v1614_v13 }
 0x116   : > { %v657_v60 = vsel %vm656_vm14, %v649_v49, %v651_v43  ;;  %v739_v26 = vsel %vm532_vm3, %v638_v38, %v649_v49 }
 0x117   : > { %v742_v1 = vsel %vm532_vm3, %v644_v58, %v657_v60 }
 0x118   : > { %521 = vrot.lane.b32.xlu0 %v1536_v3, %s1268_s14  ;;  %527 = vrot.lane.b32.xlu1 %v1503_v50, %s1268_s14 }
 0x119   : > { %829 = vrot.lane.b32.xlu2 %v763_v41, %s1269_s29 }
 0x11c   : > { %v471_v55 = vpop.permute.xlu1 %470 }
 0x11d   : > { %v469_v56 = vpop.permute.xlu0 %468  ;;  %v1690_v10 = vsel %vm368_vm1, %v471_v55, %v1624_v24 }
 0x11e   : > { %v1693_v11 = vsel %vm368_vm1, %v469_v56, %v471_v55 }
 0x11f   : > { %v732_v21 = vsel %vm532_vm3, %v1508_v52, %v1693_v11 }
 0x120   : > { %479 = vrot.lane.b32.xlu0 %v1508_v52, %s1902_s9  ;;  %481 = vrot.lane.b32.xlu1 %v1499_v47, %s1902_s9 }
 0x121   : > { %851 = vrot.lane.b32.xlu2 %v1573_v40, %s1269_s29  ;;  %v745_v40 = vsel %vm532_vm3, %v645_v57, %v658_v59 }
 0x124   : > { %v691_v61 = vpop.permute.xlu1 %690 }
 0x125   : > { %v695_v19 = vsel %vm692_vm9, %v1567_v36, %v691_v61  ;;  %v715_v62 = vpop.permute.xlu0 %714 }
 0x126   : > { %v719_v63 = vsel %vm716_vm8, %v1580_v45, %v715_v62  ;;  %v772_v0 = vsel %vm532_vm3, %v695_v19, %v707_v37  ;;  %v751_v45 = vsel %vm532_vm3, %v661_v16, %v673_v25  ;;  %v733_v16 = vsel %vm532_vm3, %v1499_v47, %v1690_v10 }
 0x127   : > { %v784_v22 = vsel %vm532_vm3, %v719_v63, %v1428_v17 }
 0x128   : > { %817 = vrot.lane.b32.xlu1 %v745_v40, %s1269_s29  ;;  %815 = vrot.lane.b32.xlu0 %v742_v1, %s1269_s29 }
 0x129   : > { %488 = vrot.lane.b32.xlu2 %v1536_v3, %s1265_s10 }
 0x12c   : > { %v667_v6 = vpop.permute.xlu1 %666 }
 0x12d   : > { %v671_v36 = vsel %vm668_vm11, %v1582_v46, %v667_v6  ;;  %v467_v25 = vpop.permute.xlu0 %466 }
 0x12e   : > { %v760_v7 = vsel %vm532_vm3, %v671_v36, %v683_v48  ;;  %v1715_v18 = vsel %vm368_vm1, %v467_v25, %v469_v56  ;;  %v736_v48 = vsel %vm532_vm3, %v1503_v50, %v1624_v24  ;;  %vm899_vm1 = vcmask 719872  }
 0x12f   : > { %v731_v20 = vsel %vm532_vm3, %v1536_v3, %v1715_v18 }
 0x130   : > { %499 = vrot.lane.b32.xlu1 %v1536_v3, %s1901_s8  ;;  %494 = vrot.lane.b32.xlu0 %v1503_v50, %s1265_s10 }
 0x131   : > { %505 = vrot.lane.b32.xlu2 %v1503_v50, %s1901_s8 }
 0x135   : > { %v655_v17 = vpop.permute.xlu0 %654 }
 0x136   : > { %v659_v43 = vsel %vm656_vm14, %v1614_v13, %v655_v17 }
 0x137   : > { %v748_v44 = vsel %vm532_vm3, %v1601_v12, %v659_v43 }
 0x138   : > { %446 = vrot.lane.b32.xlu1 %v1365_v9, %s1903_s11  ;;  %821 = vrot.lane.b32.xlu0 %v751_v45, %s1269_s29 }
 0x139   : > { %448 = vrot.lane.b32.xlu2 %v1353_v4, %s1903_s11  ;;  %v1686_v46 = vpop.permute.xlu2 %849 }
 0x140   : > { %809 = vrot.lane.b32.xlu1 %v733_v16, %s1269_s29  ;;  %807 = vrot.lane.b32.xlu0 %v732_v21, %s1269_s29 }
 0x141   : > { %843 = vrot.lane.b32.xlu2 %v784_v22, %s1269_s29  ;;  %v846_v23 = vpop.permute.xlu2 %845 }
 0x148   : > { %483 = vrot.lane.b32.xlu1 %v1503_v50, %s1902_s9  ;;  %477 = vrot.lane.b32.xlu0 %v1536_v3, %s1902_s9 }
 0x149   : > { %813 = vrot.lane.b32.xlu2 %v739_v26, %s1269_s29  ;;  %v1712_v27 = vpop.permute.xlu2 %523 }
 0x150   : > { %450 = vrot.lane.b32.xlu1 %v1363_v8, %s1903_s11  ;;  %835 = vrot.lane.b32.xlu0 %v772_v0, %s1269_s29 }
 0x151   : > { %805 = vrot.lane.b32.xlu2 %v731_v20, %s1269_s29  ;;  %v848_v28 = vpop.permute.xlu1 %847  ;;  %v1724_v30 = vpop.permute.xlu2 %833 }
 0x152   : > { %v868_v37 = vsel %vm440_vm7, %v846_v23, %v848_v28  ;;  %v869_v38 = vsel %vm440_vm7, %v848_v28, %v1686_v46 }
 0x153   : > { %v904_v42 = vsel %vm532_vm3, %v868_v37, 0  ;;  %v907_v8 = vsel %vm532_vm3, %v869_v38, 0 }
 0x154   : > { %927 = vmatpush.bf16.msra.mxu1 %v904_v42  ;;  %953 = vmatpush.bf16.msra.mxu3 %v907_v8 }
 0x158   : > { %827 = vrot.lane.b32.xlu0 %v760_v7, %s1269_s29  ;;  %819 = vrot.lane.b32.xlu1 %v748_v44, %s1269_s29 }
 0x159   : > { %811 = vrot.lane.b32.xlu2 %v736_v48, %s1269_s29  ;;  %v1741_v49 = vpop.permute.xlu2 %492 }
 0x15a   : > { %v1743_v41 = vpop.permute.xlu1 %841  ;;  %v840_v13 = vpop.permute.xlu0 %839 }
 0x15b   : > { %v866_v55 = vsel %vm440_vm7, %v840_v13, %v1743_v41 }
 0x15c   : > { %954 = vmatpush.bf16.msra.mxu3 %v866_v55 }
 0x162   : > { %v515_v12 = vpop.permute.xlu1 %514  ;;  %v513_v56 = vpop.permute.xlu0 %512 }
 0x163   : > { %v824_v57 = vpop.permute.xlu2 %823  ;;  %v519_v50 = vsel %vm416_vm5, %v513_v56, %v515_v12 }
 0x16a   : > { %v832_v58 = vpop.permute.xlu1 %831  ;;  %v526_v59 = vpop.permute.xlu0 %525 }
 0x16b   : > { %v517_v24 = vpop.permute.xlu2 %516  ;;  %v530_v60 = vsel %vm428_vm6, %v1712_v27, %v526_v59  ;;  %v863_v61 = vsel %vm440_vm7, %v832_v58, %v1724_v30 }
 0x16c   : > { %v520_v19 = vsel %vm416_vm5, %v515_v12, %v517_v24  ;;  %955 = vmatpush.bf16.msra.mxu3 %v863_v61  ;;  %v623_v62 = vsel %vm532_vm3, %v519_v50, %v530_v60 }
 0x16d   : > { %938 = vmatpush.bf16.msra.mxu2 %v623_v62 }
 0x172   : > { %v491_v63 = vpop.permute.xlu1 %490  ;;  %v838_v0 = vpop.permute.xlu0 %837 }
 0x173   : > { %v830_v40 = vpop.permute.xlu2 %829  ;;  %v865_v1 = vsel %vm440_vm7, %v838_v0, %v840_v13  ;;  %v497_v45 = vsel %vm392_vm2, %v491_v63, %v1741_v49 }
 0x174   : > { %928 = vmatpush.bf16.msra.mxu1 %v865_v1  ;;  %v862_v6 = vsel %vm440_vm7, %v830_v40, %v832_v58 }
 0x178   : > { %929 = vmatpush.bf16.msra.mxu1 %v862_v6 }
 0x17a   : > { %v1756_v36 = vpop.permute.xlu1 %503  ;;  %v502_v7 = vpop.permute.xlu0 %501 }
 0x17b   : > { %v852_v16 = vpop.permute.xlu2 %851  ;;  %v508_v21 = vsel %vm404_vm4, %v502_v7, %v1756_v36 }
 0x17c   : > { %v611_v22 = vsel %vm532_vm3, %v497_v45, %v508_v21 }
 0x17d   : > { %939 = vmatpush.bf16.msra.mxu2 %v611_v22 }
 0x182   : > { %v511_v23 = vpop.permute.xlu1 %510  ;;  %v1763_v25 = vpop.permute.xlu0 %825 }
 0x183   : > { %v489_v26 = vpop.permute.xlu2 %488  ;;  %v860_v17 = vsel %vm440_vm7, %v824_v57, %v1763_v25  ;;  %v518_v37 = vsel %vm416_vm5, %v511_v23, %v513_v56 }
 0x184   : > { %956 = vmatpush.bf16.msra.mxu3 %v860_v17  ;;  %v496_v61 = vsel %vm392_vm2, %v489_v26, %v491_v63  ;;  %v886_v63 = vld [vmem:[%s1892_s3] sm:$0xff]  ;;  %v1278_v17 = vmov 0  }
 0x185   : > { %v895_v21 = vunpack.c.h.b16 %v886_v63  ;;  %1220 = vset.pattern.permute.xlu0 %v1278_v17 }
 0x18a   : > { %v528_v20 = vpop.permute.xlu1 %527  ;;  %v522_v28 = vpop.permute.xlu0 %521 }
 0x18b   : > { %v531_v38 = vsel %vm428_vm6, %v526_v59, %v528_v20  ;;  %v506_v42 = vpop.permute.xlu2 %505  ;;  %v529_v8 = vsel %vm428_vm6, %v522_v28, %v1712_v27 }
 0x18c   : > { %v619_v43 = vsel %vm532_vm3, %v518_v37, %v529_v8  ;;  %v627_v44 = vsel %vm532_vm3, %v520_v19, %v531_v38  ;;  %v1811_v37 = vpack.c.b16 %v895_v21, %v895_v21  ;;  %v509_v38 = vsel %vm404_vm4, %v1756_v36, %v506_v42 }
 0x18d   : > { %912 = vmatpush.bf16.msra.mxu0 %v619_v43 }
 0x192   : > { %v1773_v48 = vpop.permute.xlu1 %481  ;;  %v1775_v13 = vpop.permute.xlu0 %479 }
 0x193   : > { %v1777_v55 = vpop.permute.xlu2 %448  ;;  %v486_v12 = vsel %vm380_vm0, %v1775_v13, %v1773_v48 }
 0x194   : > { %v599_v56 = vsel %vm532_vm3, %v1693_v11, %v486_v12 }
 0x195   : > { %940 = vmatpush.bf16.msra.mxu2 %v599_v56 }
 0x19a   : > { %v1784_v27 = vpop.permute.xlu1 %817  ;;  %v816_v58 = vpop.permute.xlu0 %815 }
 0x19b   : > { %v857_v59 = vsel %vm440_vm7, %v816_v58, %v1784_v27  ;;  %v844_v50 = vpop.permute.xlu2 %843 }
 0x19c   : > { %957 = vmatpush.bf16.msra.mxu3 %v857_v59 }
 0x1a2   : > { %v500_v24 = vpop.permute.xlu1 %499  ;;  %v495_v60 = vpop.permute.xlu0 %494 }
 0x1a3   : > { %v507_v19 = vsel %vm404_vm4, %v500_v24, %v502_v7  ;;  %v814_v0 = vpop.permute.xlu2 %813 }
 0x1a4   : > { %v607_v62 = vsel %vm532_vm3, %v496_v61, %v507_v19  ;;  %v856_v7 = vsel %vm440_vm7, %v814_v0, %v816_v58 }
 0x1a5   : > { %913 = vmatpush.bf16.msra.mxu0 %v607_v62 }
 0x1aa   : > { %v447_v11 = vpop.permute.xlu1 %446  ;;  %v822_v40 = vpop.permute.xlu0 %821 }
 0x1ab   : > { %v454_v1 = vsel %vm452_vm15, %v447_v11, %v1777_v55  ;;  %v859_v6 = vsel %vm440_vm7, %v822_v40, %v824_v57  ;;  %v806_v22 = vpop.permute.xlu2 %805  ;;  %v887_v57 = vld [vmem:[%s1893_s4] sm:$0xff]  ;;  %v453_v58 = vsel %vm452_vm15, %v1565_v35, %v447_v11 }
 0x1ac   : > { %930 = vmatpush.bf16.msra.mxu1 %v859_v6  ;;  %v587_v45 = vsel %vm532_vm3, %v454_v1, %v1508_v52  ;;  %v870_v52 = vsel %vm440_vm7, %v1686_v46, %v852_v16  ;;  %890 = vperm.xlu0 %1220, %v887_v57   ;;  %v1279_v16 = vmov 1  }
 0x1ad   : > { %941 = vmatpush.bf16.msra.mxu2 %v587_v45  ;;  %v910_v46 = vsel %vm532_vm3, %v870_v52, 0  ;;  %1221 = vset.pattern.permute.xlu1 %v1279_v16 }
 0x1ae   : > { %994 = vperm.xlu1 %1221, %v887_v57  }
 0x1b0   : > { %931 = vmatpush.bf16.msra.mxu1 %v856_v7 }
 0x1b1   : > { %942 = vmatpush.bf16.msra.mxu2 %v1560_v33  ;;  %v498_v33 = vsel %vm392_vm2, %v1741_v49, %v495_v60  ;;  %v894_v49 = vunpack.c.l.b16 %v886_v63 }
 0x1b2   : > { %v1804_v23 = vpop.permute.xlu1 %809  ;;  %v808_v26 = vpop.permute.xlu0 %807  ;;  %v615_v8 = vsel %vm532_vm3, %v498_v33, %v509_v38 }
 0x1b3   : > { %v853_v20 = vsel %vm440_vm7, %v806_v22, %v808_v26  ;;  %v854_v28 = vsel %vm440_vm7, %v808_v26, %v1804_v23  ;;  %v896_v56 = vpack.c.b16 %v894_v49, %v894_v49 }
 0x1b4   : > { %932 = vmatpush.bf16.msra.mxu1 %v853_v20  ;;  %958 = vmatpush.bf16.msra.mxu3 %v854_v28 }
 0x1b5   : > { %943 = vmatpush.bf16.msra.mxu2 %v1547_v14  ;;  %v867_v14 = vsel %vm440_vm7, %v1743_v41, %v844_v50  ;;  %1222 = vset.pattern.permute.xlu0 %v1279_v16 }
 0x1b7   : > { %1156 = vmatmul.msk.bf16.vlgmr.msra.gmra.mxu3 %vm899_vm1, %v1811_v37  ;;  %1155 = vmatmul.msk.bf16.vlgmr.msra.gmra.mxu1 %vm899_vm1, %v1811_v37 }
 0x1b8   : > { %964 = vmatpush.bf16.msrb.mxu1 %v627_v44  ;;  %979 = vmatpush.bf16.msrb.mxu3 %v910_v46 }
 0x1b9   : > { %944 = vmatpush.bf16.msra.mxu2 %v1511_v53  ;;  %v539_v53 = vsel %vm532_vm3, %v1365_v9, %v1482_v32 }
 0x1ba   : > { %v484_v43 = vpop.permute.xlu1 %483  ;;  %v478_v44 = vpop.permute.xlu0 %477 }
 0x1bb   : > { %v487_v36 = vsel %vm380_vm0, %v1773_v48, %v484_v43  ;;  %v485_v42 = vsel %vm380_vm0, %v478_v44, %v1775_v13  ;;  %v583_v48 = vsel %vm532_vm3, %v453_v58, %v1536_v3 }
 0x1bc   : > { %965 = vmatpush.bf16.msrb.mxu1 %v615_v8  ;;  %980 = vmatpush.bf16.msrb.mxu3 %v867_v14  ;;  %v595_v12 = vsel %vm532_vm3, %v1715_v18, %v485_v42  ;;  %v603_v41 = vsel %vm532_vm3, %v1690_v10, %v487_v36 }
 0x1bd   : > { %914 = vmatpush.bf16.msra.mxu0 %v595_v12  ;;  %945 = vmatpush.bf16.msra.mxu2 %v539_v53 }
 0x1c0   : > { %966 = vmatpush.bf16.msrb.mxu1 %v603_v41  ;;  %946 = vmatmul.bf16.vlgmr.msra.gmra.mxu2 %v896_v56 }
 0x1c1   : > { %915 = vmatpush.bf16.msra.mxu0 %v583_v48 }
 0x1c2   : > { %v451_v18 = vpop.permute.xlu1 %450  ;;  %v836_v13 = vpop.permute.xlu0 %835 }
 0x1c3   : > { %v455_v9 = vsel %vm452_vm15, %v1777_v55, %v451_v18  ;;  %v864_v32 = vsel %vm440_vm7, %v1724_v30, %v836_v13 }
 0x1c4   : > { %981 = vmatpush.bf16.msrb.mxu3 %v864_v32  ;;  %v591_v35 = vsel %vm532_vm3, %v455_v9, %v1499_v47 }
 0x1c5   : > { %916 = vmatpush.bf16.msra.mxu0 %v1563_v34  ;;  %967 = vmatpush.bf16.msrb.mxu1 %v591_v35  ;;  %v812_v34 = vpop.permute.xlu2 %811 }
 0x1c9   : > { %917 = vmatpush.bf16.msra.mxu0 %v1534_v2  ;;  %968 = vmatpush.bf16.msrb.mxu1 %v1571_v39  ;;  %v535_v2 = vsel %vm532_vm3, %v1355_v5, %v1479_v31 }
 0x1ca   : > { %v828_v3 = vpop.permute.xlu0 %827  ;;  %v820_v59 = vpop.permute.xlu1 %819 }
 0x1cb   : > { %v861_v10 = vsel %vm440_vm7, %v1763_v25, %v828_v3  ;;  %v858_v47 = vsel %vm440_vm7, %v1784_v27, %v820_v59 }
 0x1cc   : > { %982 = vmatpush.bf16.msrb.mxu3 %v861_v10 }
 0x1cd   : > { %918 = vmatpush.bf16.msra.mxu0 %v1515_v54  ;;  %969 = vmatpush.bf16.msrb.mxu1 %v1550_v15  ;;  %v855_v54 = vsel %vm440_vm7, %v1804_v23, %v812_v34  ;;  %v543_v15 = vsel %vm532_vm3, %v1353_v4, %v1475_v29 }
 0x1d0   : > { %983 = vmatpush.bf16.msrb.mxu3 %v858_v47 }
 0x1d1   : > { %919 = vmatpush.bf16.msra.mxu0 %v535_v2  ;;  %970 = vmatpush.bf16.msrb.mxu1 %v1506_v51 }
 0x1d4   : > { %920 = vmatmul.bf16.vlgmr.msra.gmra.mxu0 %v896_v56  ;;  %984 = vmatpush.bf16.msrb.mxu3 %v855_v54 }
 0x1d5   : > { %971 = vmatpush.bf16.msrb.mxu1 %v543_v15 }
 0x1d7   : > { %1157 = vmatmul.msk.bf16.vlgmr.msrb.gmra.mxu3 %vm899_vm1, %v1811_v37 }
 0x1d8   : > { %972 = vmatmul.bf16.vlgmr.msrb.gmra.mxu1 %v896_v56 }
 0x21e   : > { %v891_v51 = vpop.permute.xlu0 %890 }
 0x220   : > { %v995_v27 = vpop.permute.xlu1 %994 }
 0x234   : > { %v934_v39 = vpop.f32.mrf.mxu1 }
 0x23a   : > { %v960_v5 = vpop.f32.mrf.mxu3 }
 0x23c   : > { %v936_v31 = vpop.f32.mrf.mxu1 }
 0x242   : > { %v962_v30 = vpop.f32.mrf.mxu3 }
 0x243   : > { %v947_v25 = vpop.f32.mrf.mxu2 }
 0x244   : > { %v948_v55 = vadd.f32 %v947_v25, %v891_v51 }
 0x246   : > { %v961_v4 = vadd.f32 %v960_v5, %v948_v55 }
 0x248   : > { %vm991_vm0 = vcmp.gt.f32.partialorder %v961_v4, 0.0  ;;  %v998_v29 = vmul.f32 %v995_v27, %v961_v4 }
 0x24a   : > { %v1001_v50 = vsel %vm991_vm0, %v961_v4, %v998_v29 }
 0x24b   : > { %1004 = vst [vmem:[%s342_s25 + $0x8] sm:$0xff] %v1001_v50  ;;  %v949_v24 = vpop.f32.mrf.mxu2 }
 0x251   : > { %v921_v60 = vpop.f32.mrf.mxu0 }
 0x252   : > { %v922_v61 = vadd.f32 %v921_v60, %v891_v51 }
 0x254   : > { %v935_v19 = vadd.f32 %v934_v39, %v922_v61 }
 0x255   : > { %v973_v62 = vpop.f32.mrf.mxu1 }
 0x256   : > { %vm990_vm2 = vcmp.gt.f32.partialorder %v935_v19, 0.0  ;;  %v997_v0 = vmul.f32 %v995_v27, %v935_v19  ;;  %v974_v11 = vadd.f32 %v973_v62, %v891_v51 }
 0x258   : > { %v1000_v40 = vsel %vm990_vm2, %v935_v19, %v997_v0 }
 0x259   : > { %1003 = vst [vmem:[%s342_s25] sm:$0xff] %v1000_v40  ;;  %v923_v1 = vpop.f32.mrf.mxu0 }
 0x25a   : > { %v986_v6 = vpop.f32.mrf.mxu3 }
 0x25b   : > { %v987_v45 = vadd.f32 %v986_v6, %v974_v11 }
 0x25d   : > { %vm992_vm3 = vcmp.gt.f32.partialorder %v987_v45, 0.0  ;;  %v999_v63 = vmul.f32 %v995_v27, %v987_v45  ;;  %v975_v7 = vpop.f32.mrf.mxu1 }
 0x25f   : > { %v1002_v21 = vsel %vm992_vm3, %v987_v45, %v999_v63 }
 0x260   : > { %1005 = vst [vmem:[%s342_s25 + $0x10] sm:$0xff] %v1002_v21 }
 0x262   : > { %v988_v22 = vpop.f32.mrf.mxu3 }
 0x263 PF: > { %s15_s22 = sadd.s32 1, %s1261_s22   ;;  %s1904_s18 = smov %s1253_s20 }
 0x264   : > { %p12_p10 = scmp.ge.s32.totalorder %s15_s22, 34   ;;  %s1905_s19 = smov %s1257_s21 }
 0x265   : > { %s1906_s20 = smov %s1909_s23  ;;  %s1907_s21 = smov %s1913_s24 }
 0x266   :  { %14 = sbr.rel (!%p12_p10) target bundleno = 3 (0x3), region = 76 }

</bundles_post_ra>
